<compile_context>
chip_gen: v7x
topology: tpu7x:2x2x1
jax: 0.10.0
libtpu: 0.0.40
codegen_flags: <defaults>
</compile_context>

<pallas_src>
import math

import jax
import jax.numpy as jnp
from jax.experimental import pallas as pl
from jax.experimental.pallas import tpu as pltpu


def _round_up(x, m):
    return ((x + m - 1) // m) * m


def _cdiv(a, b):
    return -(-a // b)


def _dropout_multiplier(rng_key, rate, shape):
    # TODO(synk): torch's dropout RNG stream cannot be reproduced; the keep
    # mask is drawn with jax.random (inverted dropout, same distribution).
    keep = jax.random.bernoulli(rng_key, 1.0 - rate, shape)
    return keep.astype(jnp.float32) / (1.0 - rate)


def _vmem_limit_bytes():
    cap = 128 * 2**20
    try:
        cap = int(getattr(pltpu.get_tpu_info(), "vmem_capacity_bytes", cap))
    except Exception:
        pass
    # ~52 MiB on v7x (64 MiB VMEM), ~105 MiB on v5e/v6e (128 MiB VMEM).
    return max(32 * 2**20, min(int(cap * 0.82), cap - (8 << 20)))


def _auto_tile_c(B, D, w_bytes, x_bytes, logit_bytes, with_logits, training,
                 vmem_limit):
    # Resident blocks (Pallas double-buffers them even with constant maps).
    resident = 2 * B * D * x_bytes + 2 * (4 * B + 1) * 4
    # Per streamed class column: 2x weight buffers, 2x inv-norm, optionally
    # 2x logits buffers, plus f32 elementwise intermediates (cos, masks, exp).
    per_c = 2 * D * w_bytes + 2 * 4
    if with_logits:
        per_c += 2 * B * logit_bytes
    per_c += (6 if training else 4) * B * 4
    budget = int(vmem_limit * 0.75) - resident - (2 << 20)
    tc = max(budget // per_c, 512)
    return max(128, (tc // 128) * 128)


def _make_arcface_kernel(*, training, with_logits, scale, num_valid, padded):
    def kernel(xn_ref, tgt_ref, ctm_ref, ftl_ref, newt_ref, w_ref, invw_ref,
               *out_refs):
        i = 0
        logits_ref = m_ref = l_ref = None
        if with_logits:
            logits_ref = out_refs[i]
            i += 1
        if training:
            m_ref, l_ref = out_refs[i], out_refs[i + 1]

        c = pl.program_id(0)
        bsz = xn_ref.shape[0]
        tile_c = w_ref.shape[0]

        # cos_theta for this class tile: bf16/f32 MXU matmul with f32
        # accumulation; per-row 1/||w|| was precomputed in f32 in the wrapper.
        cos = jax.lax.dot_general(
            xn_ref[...], w_ref[...], (((1,), (1,)), ((), ())),
            preferred_element_type=jnp.float32)                  # (B, TILE_C)
        cos = jnp.clip(cos * invw_ref[...], -1.0, 1.0)

        col = (jax.lax.broadcasted_iota(jnp.int32, (bsz, tile_c), 1)
               + c * tile_c)
        onehot = col == tgt_ref[...]                             # (B, TILE_C)
        new_t = newt_ref[...]                                    # (1, 1)

        # Hard-example reweighting (uses the UPDATED t, matching torch order),
        # then scatter final_target_logit into the target column.
        cos_mod = jnp.where(cos > ctm_ref[...], cos * (new_t + cos), cos)
        cos_mod = jnp.where(onehot, ftl_ref[...], cos_mod)
        logits = cos_mod * scale

        def finish(lg):
            if with_logits:
                logits_ref[...] = lg.astype(logits_ref.dtype)
            if training:
                # Per-tile (max, sumexp); combined across tiles in the wrapper
                # so the grid axis stays fully parallel.
                m = jnp.max(lg, axis=1, keepdims=True)           # (B, 1)
                s = jnp.sum(jnp.exp(lg - m), axis=1, keepdims=True)
                m_ref[...] = m.reshape(m_ref.shape)
                l_ref[...] = s.reshape(l_ref.shape)

        if padded:
            # Padded (out-of-range) classes only exist in the last tile.
            last = pl.num_programs(0) - 1

            @pl.when(c == last)
            def _():
                finish(jnp.where(col < num_valid, logits, -1e30))

            @pl.when(c < last)
            def _():
                finish(logits)
        else:
            finish(logits)

    return kernel


def arcface_forward(features, targets, weight, t, *, training=False,
                    dropout_rate=0.3, scale=64.0, margin=0.35, weight_loss=1.0,
                    rng_key=None, tile_c=None, matmul_dtype=jnp.bfloat16,
                    logits_dtype=jnp.float32, return_logits=False):
    """ArcfaceLoss_Dropout.forward.

    Returns:
      training & return_logits : (loss, new_t, logits)
      training                 : (loss, new_t)          # torch returns loss only
      eval                     : (logits, new_t)
    `new_t` is the updated `t` buffer (torch mutates it in place).  The weight
    is streamed in `matmul_dtype` (bf16 default, f32 accumulation)."""
    f32 = jnp.float32
    B, D = features.shape
    C, D2 = weight.shape
    assert D == D2
    matmul_dtype = jnp.dtype(matmul_dtype)
    logits_dtype = jnp.dtype(logits_dtype)
    with_logits = (not training) or bool(return_logits)

    cos_m, sin_m = math.cos(margin), math.sin(margin)
    threshold = math.cos(math.pi - margin)
    mm = math.sin(math.pi - margin) * margin

    # ------------------ prologue (plain XLA, O(B*D)) -----------------------
    x = features.astype(f32)
    x = x * jax.lax.rsqrt(
        jnp.maximum(jnp.sum(x * x, axis=1, keepdims=True), 1e-24))
    if training and dropout_rate > 0.0:
        if rng_key is None:
            rng_key = jax.random.PRNGKey(0)
        x = x * _dropout_multiplier(rng_key, float(dropout_rate), (B, D))

    tgt_i = targets.astype(jnp.int32)
    wt = jnp.take(weight, tgt_i, axis=0).astype(f32)
    wt = wt * jax.lax.rsqrt(
        jnp.maximum(jnp.sum(wt * wt, axis=1, keepdims=True), 1e-24))
    tl = jnp.clip(jnp.sum(x * wt, axis=1, keepdims=True), -1.0, 1.0)   # (B, 1)
    sin_t = jnp.sqrt(jnp.clip(1.0 - tl * tl, 0.0, 1.0))
    ctm = tl * cos_m - sin_t * sin_m
    ftl = jnp.where(tl > threshold, ctm, tl - mm)
    new_t = jnp.mean(tl) * 0.01 + 0.99 * jnp.asarray(t, f32).reshape(())

    # f32 per-row inverse weight norms (fused with the cast/pad pass over W).
    inv_wn = jax.lax.rsqrt(jnp.maximum(
        jnp.sum(jnp.square(weight.astype(f32)), axis=1), 1e-24))        # (C,)

    # ------------------ class tiling ---------------------------------------
    vmem_limit = _vmem_limit_bytes()
    c128 = _round_up(C, 128)
    if tile_c is None:
        tile_c = _auto_tile_c(B, D, matmul_dtype.itemsize, matmul_dtype.itemsize,
                              logits_dtype.itemsize, with_logits, training,
                              vmem_limit)
    tile_c = max(128, (int(tile_c) // 128) * 128)
    tile_c = min(tile_c, c128)
    num_tiles = _cdiv(c128, tile_c)
    tile_c = _round_up(_cdiv(c128, num_tiles), 128)   # even tiles, minimal pad
    c_pad = num_tiles * tile_c
    padded = c_pad != C

    w_in = weight
    if c_pad != C:
        w_in = jnp.pad(w_in, ((0, c_pad - C), (0, 0)))
    if w_in.dtype != matmul_dtype:
        w_in = w_in.astype(matmul_dtype)
    invw_in = inv_wn
    if c_pad != C:
        invw_in = jnp.pad(invw_in, (0, c_pad - C))
    invw_in = invw_in.reshape(1, c_pad)
    xn = x.astype(matmul_dtype)
    tgt2d = tgt_i.reshape(B, 1)
    newt2d = new_t.reshape(1, 1)

    # ------------------ pallas_call ----------------------------------------
    kernel = _make_arcface_kernel(training=training, with_logits=with_logits,
                                  scale=float(scale), num_valid=C,
                                  padded=padded)

    in_specs = [
        pl.BlockSpec((B, D), lambda c: (0, 0)),        # normalized+dropped x
        pl.BlockSpec((B, 1), lambda c: (0, 0)),        # targets
        pl.BlockSpec((B, 1), lambda c: (0, 0)),        # cos_theta_m
        pl.BlockSpec((B, 1), lambda c: (0, 0)),        # final_target_logit
        pl.BlockSpec((1, 1), lambda c: (0, 0)),        # updated t
        pl.BlockSpec((tile_c, D), lambda c: (c, 0)),   # weight tile (streamed)
        pl.BlockSpec((1, tile_c), lambda c: (0, c)),   # 1/||w|| tile (streamed)
    ]
    out_specs, out_shapes = [], []
    if with_logits:
        out_specs.append(pl.BlockSpec((B, tile_c), lambda c: (0, c)))
        out_shapes.append(jax.ShapeDtypeStruct((B, c_pad), logits_dtype))
    if training:
        for _ in range(2):                              # per-tile max / sumexp
            out_specs.append(pl.BlockSpec((1, B, 1), lambda c: (c, 0, 0)))
            out_shapes.append(
                jax.ShapeDtypeStruct((num_tiles, B, 1), jnp.float32))

    outs = pl.pallas_call(
        kernel,
        grid=(num_tiles,),
        in_specs=in_specs,
        out_specs=tuple(out_specs),
        out_shape=tuple(out_shapes),
        compiler_params=pltpu.CompilerParams(
            dimension_semantics=("parallel",),
            vmem_limit_bytes=int(vmem_limit)),
    )(xn, tgt2d, ctm, ftl, newt2d, w_in, invw_in)
    if not isinstance(outs, (tuple, list)):
        outs = (outs,)

    idx = 0
    logits = None
    if with_logits:
        logits = outs[idx]
        idx += 1
        if c_pad != C:
            logits = logits[:, :C]
    if training:
        m_all, l_all = outs[idx], outs[idx + 1]          # (num_tiles, B, 1)
        m_max = jnp.max(m_all, axis=0)                   # (B, 1)
        sumexp = jnp.sum(l_all * jnp.exp(m_all - m_max), axis=0)
        lse = jnp.log(sumexp) + m_max                    # (B, 1)
        loss = jnp.mean(lse[:, 0] - ftl[:, 0] * scale) * weight_loss
        if with_logits:
            return loss, new_t, logits
        return loss, new_t
    return logits, new_t


# ----------------------------------------------------------------------------
# Pure-JAX reference (faithful translation of the torch module; optional
# bf16-mirroring mode for checking the bf16-streamed kernel path).
# ----------------------------------------------------------------------------
def _reference(features, targets, weight, t, drop_mult, *, scale=64.0,
               margin=0.35, weight_loss=1.0, matmul_dtype=jnp.float32,
               tl_from_matmul=True):
    f32 = jnp.float32
    cos_m, sin_m = math.cos(margin), math.sin(margin)
    threshold = math.cos(math.pi - margin)
    mm = math.sin(math.pi - margin) * margin
    B = features.shape[0]
    C = weight.shape[0]

    x = features.astype(f32)
    x = x * jax.lax.rsqrt(
        jnp.maximum(jnp.sum(x * x, axis=1, keepdims=True), 1e-24))
    x = x * drop_mult
    inv_wn = jax.lax.rsqrt(jnp.maximum(
        jnp.sum(jnp.square(weight.astype(f32)), axis=1), 1e-24))        # (C,)
    if jnp.dtype(matmul_dtype) == jnp.dtype(jnp.float32):
        cos = jnp.dot(x, weight.astype(f32).T,
                      precision=jax.lax.Precision.HIGHEST) * inv_wn[None, :]
    else:
        cos = jnp.dot(x.astype(matmul_dtype), weight.astype(matmul_dtype).T,
                      preferred_element_type=f32) * inv_wn[None, :]
    cos = jnp.clip(cos, -1.0, 1.0)

    if tl_from_matmul:
        tl = cos[jnp.arange(B), targets][:, None]
    else:
        wt = jnp.take(weight, targets, axis=0).astype(f32)
        wt = wt * jax.lax.rsqrt(
            jnp.maximum(jnp.sum(wt * wt, axis=1, keepdims=True), 1e-24))
        tl = jnp.clip(jnp.sum(x * wt, axis=1, keepdims=True), -1.0, 1.0)

    sin_t = jnp.sqrt(jnp.clip(1.0 - tl * tl, 0.0, 1.0))
    ctm = tl * cos_m - sin_t * sin_m
    ftl = jnp.where(tl > threshold, ctm, tl - mm)
    new_t = jnp.mean(tl) * 0.01 + 0.99 * jnp.asarray(t, f32).reshape(())
    cos = jnp.where(cos > ctm, cos * (new_t + cos), cos)
    onehot = jax.nn.one_hot(targets, C, dtype=bool)
    cos = jnp.where(onehot, jnp.broadcast_to(ftl, cos.shape), cos)
    logits = cos * scale
    lse = jax.scipy.special.logsumexp(logits, axis=1)
    loss = jnp.mean(lse - ftl[:, 0] * scale) * weight_loss
    return logits, new_t, loss


if __name__ == "__main__":
    B, in_feat, num_classes = 8, 128, 200        # C=200 exercises tile padding

    key = jax.random.PRNGKey(0)
    kf, kw, kt, kd = jax.random.split(key, 4)
    features = jax.random.normal(kf, (B, in_feat), jnp.float32)
    # nn.init.kaiming_uniform_(weight, a=sqrt(1)): bound = sqrt(3 / fan_in)
    bound = math.sqrt(3.0 / in_feat)
    weight = jax.random.uniform(kw, (num_classes, in_feat), jnp.float32,
                                minval=-bound, maxval=bound)
    targets = jax.random.randint(kt, (B,), 0, num_classes, jnp.int32)
    t0 = jnp.zeros((), jnp.float32)
    ones = jnp.ones((B, in_feat), jnp.float32)

    # ---- 1) eval, f32 matmul path, forced 2-tile grid ----------------------
    logits, new_t = arcface_forward(features, targets, weight, t0,
                                    training=False, tile_c=128,
                                    matmul_dtype=jnp.float32)
    jax.block_until_ready(logits)
    ref_logits, ref_t, _ = _reference(features, targets, weight, t0, ones)
    assert logits.shape == (B, num_classes)
    assert jnp.allclose(logits, ref_logits, atol=5e-2, rtol=1e-3), \
        float(jnp.max(jnp.abs(logits - ref_logits)))
    assert jnp.allclose(new_t, ref_t, atol=1e-4)

    # ---- 2) training, f32 path, dropout, logits requested ------------------
    loss, new_t_tr, logits_tr = arcface_forward(
        features, targets, weight, t0, training=True, dropout_rate=0.3,
        rng_key=kd, tile_c=128, matmul_dtype=jnp.float32, return_logits=True)
    jax.block_until_ready(loss)
    drop_mult = _dropout_multiplier(kd, 0.3, (B, in_feat))
    ref_logits_tr, ref_t_tr, ref_loss = _reference(
        features, targets, weight, t0, drop_mult)
    assert jnp.allclose(logits_tr, ref_logits_tr, atol=5e-2, rtol=1e-3), \
        float(jnp.max(jnp.abs(logits_tr - ref_logits_tr)))
    assert jnp.allclose(new_t_tr, ref_t_tr, atol=1e-4)
    assert jnp.allclose(loss, ref_loss, atol=5e-2, rtol=1e-2), \
        (float(loss), float(ref_loss))

    # ---- 3) default (bf16-streamed) path, eval ------------------------------
    logits_bf, new_t_bf = arcface_forward(features, targets, weight, t0,
                                          training=False)
    jax.block_until_ready(logits_bf)
    mref_logits, mref_t, _ = _reference(features, targets, weight, t0, ones,
                                        matmul_dtype=jnp.bfloat16,
                                        tl_from_matmul=False)
    frac_bad = jnp.mean(
        (jnp.abs(logits_bf - mref_logits) > 5e-2).astype(jnp.float32))
    assert float(frac_bad) <= 2e-3, float(frac_bad)
    assert jnp.allclose(new_t_bf, mref_t, atol=1e-4)

    # ---- 4) default path, training fast path (loss only, no logits write) --
    loss_bf, new_t_bf_tr = arcface_forward(
        features, targets, weight, t0, training=True, dropout_rate=0.3,
        rng_key=kd)
    jax.block_until_ready(loss_bf)
    assert bool(jnp.isfinite(loss_bf)), float(loss_bf)
    assert 0.0 < float(loss_bf) < 1000.0, float(loss_bf)
    assert jnp.allclose(new_t_bf_tr, ref_t_tr, atol=1e-4)

    print("KERNEL_OK")
</pallas_src>

<mosaic_0001>
module attributes {stable_mosaic.version = 11 : i64} {
  func.func @kernel(%arg0: i32, %arg1: memref<8x128xf32, #tpu.memory_space<vmem>>, %arg2: memref<8x1xi32, #tpu.memory_space<vmem>>, %arg3: memref<8x1xf32, #tpu.memory_space<vmem>>, %arg4: memref<8x1xf32, #tpu.memory_space<vmem>>, %arg5: memref<1x1xf32, #tpu.memory_space<vmem>>, %arg6: memref<128x128xf32, #tpu.memory_space<vmem>>, %arg7: memref<1x128xf32, #tpu.memory_space<vmem>>, %arg8: memref<8x128xf32, #tpu.memory_space<vmem>>) attributes {dimension_semantics = [#tpu.dimension_semantics<parallel>], iteration_bounds = array<i64: 2>, scalar_prefetch = 0 : i64, scratch_operands = 0 : i64, tpu.core_type = #tpu.core_type<tc>, window_params = [{pipeline_mode = #tpu.pipeline_mode<synchronous>, transform_indices = @transform_0, window_bounds = array<i64: 8, 128>}, {pipeline_mode = #tpu.pipeline_mode<synchronous>, transform_indices = @transform_1, window_bounds = array<i64: 8, 1>}, {pipeline_mode = #tpu.pipeline_mode<synchronous>, transform_indices = @transform_2, window_bounds = array<i64: 8, 1>}, {pipeline_mode = #tpu.pipeline_mode<synchronous>, transform_indices = @transform_3, window_bounds = array<i64: 8, 1>}, {pipeline_mode = #tpu.pipeline_mode<synchronous>, transform_indices = @transform_4, window_bounds = array<i64: 1, 1>}, {transform_indices = @transform_5, window_bounds = array<i64: 128, 128>}, {transform_indices = @transform_6, window_bounds = array<i64: 1, 128>}, {transform_indices = @transform_7, window_bounds = array<i64: 8, 128>}]} {
    %c0 = arith.constant 0 : index
    %c0_0 = arith.constant 0 : index
    %0 = vector.load %arg1[%c0, %c0_0] : memref<8x128xf32, #tpu.memory_space<vmem>>, vector<8x128xf32>
    %c0_1 = arith.constant 0 : index
    %c0_2 = arith.constant 0 : index
    %1 = vector.load %arg6[%c0_1, %c0_2] : memref<128x128xf32, #tpu.memory_space<vmem>>, vector<128x128xf32>
    %cst = arith.constant dense<0.000000e+00> : vector<8x128xf32>
    %2 = tpu.matmul %0, %1, %cst {dimension_numbers = #tpu.dot_dimension_numbers<[1], [1], [0], [0], [0, 0, 1, 0], [], []>} : vector<8x128xf32>, vector<128x128xf32>, vector<8x128xf32> -> vector<8x128xf32>
    %c0_3 = arith.constant 0 : index
    %c0_4 = arith.constant 0 : index
    %3 = vector.load %arg7[%c0_3, %c0_4] : memref<1x128xf32, #tpu.memory_space<vmem>>, vector<1x128xf32>
    %4 = vector.broadcast %3 : vector<1x128xf32> to vector<8x128xf32>
    %5 = arith.mulf %2, %4 : vector<8x128xf32>
    %cst_5 = arith.constant -1.000000e+00 : f32
    %cst_6 = arith.constant 1.000000e+00 : f32
    %6 = vector.broadcast %cst_5 : f32 to vector<8x128xf32>
    %7 = arith.maximumf %6, %5 : vector<8x128xf32>
    %8 = vector.broadcast %cst_6 : f32 to vector<8x128xf32>
    %9 = arith.minimumf %8, %7 : vector<8x128xf32>
    %10 = tpu.iota {dimensions = array<i32: 1>} : vector<8x128xi32>
    %c128_i32 = arith.constant 128 : i32
    %11 = arith.muli %arg0, %c128_i32 : i32
    %12 = vector.broadcast %11 : i32 to vector<8x128xi32>
    %13 = arith.addi %10, %12 : vector<8x128xi32>
    %c0_7 = arith.constant 0 : index
    %c0_8 = arith.constant 0 : index
    %14 = vector.load %arg2[%c0_7, %c0_8] : memref<8x1xi32, #tpu.memory_space<vmem>>, vector<8x1xi32>
    %15 = vector.broadcast %14 : vector<8x1xi32> to vector<8x128xi32>
    %16 = arith.cmpi eq, %13, %15 : vector<8x128xi32>
    %c0_9 = arith.constant 0 : index
    %c0_10 = arith.constant 0 : index
    %17 = vector.load %arg5[%c0_9, %c0_10] : memref<1x1xf32, #tpu.memory_space<vmem>>, vector<1x1xf32>
    %c0_11 = arith.constant 0 : index
    %c0_12 = arith.constant 0 : index
    %18 = vector.load %arg3[%c0_11, %c0_12] : memref<8x1xf32, #tpu.memory_space<vmem>>, vector<8x1xf32>
    %19 = vector.broadcast %18 : vector<8x1xf32> to vector<8x128xf32>
    %20 = arith.cmpf ogt, %9, %19 : vector<8x128xf32>
    %21 = vector.broadcast %17 : vector<1x1xf32> to vector<8x128xf32>
    %22 = arith.addf %21, %9 : vector<8x128xf32>
    %23 = arith.mulf %9, %22 : vector<8x128xf32>
    %24 = arith.select %20, %23, %9 : vector<8x128xi1>, vector<8x128xf32>
    %c0_13 = arith.constant 0 : index
    %c0_14 = arith.constant 0 : index
    %25 = vector.load %arg4[%c0_13, %c0_14] : memref<8x1xf32, #tpu.memory_space<vmem>>, vector<8x1xf32>
    %26 = vector.shape_cast %25 : vector<8x1xf32> to vector<8x1xf32>
    %27 = vector.broadcast %26 : vector<8x1xf32> to vector<8x128xf32>
    %28 = arith.select %16, %27, %24 : vector<8x128xi1>, vector<8x128xf32>
    %cst_15 = arith.constant 6.400000e+01 : f32
    %29 = vector.broadcast %cst_15 : f32 to vector<8x128xf32>
    %30 = arith.mulf %28, %29 : vector<8x128xf32>
    %c1_i32 = arith.constant 1 : i32
    %31 = arith.cmpi eq, %arg0, %c1_i32 : i32
    %32 = arith.extui %31 : i1 to i32
    %c0_i32 = arith.constant 0 : i32
    %33 = arith.cmpi ne, %32, %c0_i32 : i32
    scf.if %33 {
      %c200_i32 = arith.constant 200 : i32
      %37 = vector.broadcast %c200_i32 : i32 to vector<8x128xi32>
      %38 = arith.cmpi slt, %13, %37 : vector<8x128xi32>
      %cst_18 = arith.constant -1.000000e+30 : f32
      %39 = vector.broadcast %cst_18 : f32 to vector<8x128xf32>
      %40 = arith.select %38, %30, %39 : vector<8x128xi1>, vector<8x128xf32>
      %c0_19 = arith.constant 0 : index
      %c0_20 = arith.constant 0 : index
      %41 = vector.load %arg8[%c0_19, %c0_20] : memref<8x128xf32, #tpu.memory_space<vmem>>, vector<8x128xf32>
      tpu.vector_store %arg8[%c0_19, %c0_20], %40 {strides = array<i32>} : memref<8x128xf32, #tpu.memory_space<vmem>>, vector<8x128xf32>,
    } else {
    }
    %c1_i32_16 = arith.constant 1 : i32
    %34 = arith.cmpi slt, %arg0, %c1_i32_16 : i32
    %35 = arith.extui %34 : i1 to i32
    %c0_i32_17 = arith.constant 0 : i32
    %36 = arith.cmpi ne, %35, %c0_i32_17 : i32
    scf.if %36 {
      %c0_18 = arith.constant 0 : index
      %c0_19 = arith.constant 0 : index
      %37 = vector.load %arg8[%c0_18, %c0_19] : memref<8x128xf32, #tpu.memory_space<vmem>>, vector<8x128xf32>
      tpu.vector_store %arg8[%c0_18, %c0_19], %30 {strides = array<i32>} : memref<8x128xf32, #tpu.memory_space<vmem>>, vector<8x128xf32>,
    } else {
    }
    return
  }
  func.func @transform_0(%arg0: i32) -> (i32, i32) {
    %c0_i32 = arith.constant 0 : i32
    %c0_i32_0 = arith.constant 0 : i32
    %c0_i32_1 = arith.constant 0 : i32
    return %c0_i32, %c0_i32_0 : i32, i32
  }
  func.func @transform_1(%arg0: i32) -> (i32, i32) {
    %c0_i32 = arith.constant 0 : i32
    %c0_i32_0 = arith.constant 0 : i32
    %c0_i32_1 = arith.constant 0 : i32
    return %c0_i32, %c0_i32_0 : i32, i32
  }
  func.func @transform_2(%arg0: i32) -> (i32, i32) {
    %c0_i32 = arith.constant 0 : i32
    %c0_i32_0 = arith.constant 0 : i32
    %c0_i32_1 = arith.constant 0 : i32
    return %c0_i32, %c0_i32_0 : i32, i32
  }
  func.func @transform_3(%arg0: i32) -> (i32, i32) {
    %c0_i32 = arith.constant 0 : i32
    %c0_i32_0 = arith.constant 0 : i32
    %c0_i32_1 = arith.constant 0 : i32
    return %c0_i32, %c0_i32_0 : i32, i32
  }
  func.func @transform_4(%arg0: i32) -> (i32, i32) {
    %c0_i32 = arith.constant 0 : i32
    %c0_i32_0 = arith.constant 0 : i32
    %c0_i32_1 = arith.constant 0 : i32
    return %c0_i32, %c0_i32_0 : i32, i32
  }
  func.func @transform_5(%arg0: i32) -> (i32, i32) {
    %c0_i32 = arith.constant 0 : i32
    %c0_i32_0 = arith.constant 0 : i32
    return %arg0, %c0_i32 : i32, i32
  }
  func.func @transform_6(%arg0: i32) -> (i32, i32) {
    %c0_i32 = arith.constant 0 : i32
    %c0_i32_0 = arith.constant 0 : i32
    return %c0_i32, %arg0 : i32, i32
  }
  func.func @transform_7(%arg0: i32) -> (i32, i32) {
    %c0_i32 = arith.constant 0 : i32
    %c0_i32_0 = arith.constant 0 : i32
    return %c0_i32, %arg0 : i32, i32
  }
}

</mosaic_0001>

<bundles_post_ra>
// kernel: tpu_custom_call.1
= control target key start
LH: loop header
LB: loop body
LE: loop exit
PB: predicated region body
PF: predicated region fallthrough
CT: control target
= control target key end

     0   :  { %s1510_s0 = inlined_call_operand.hbm [shape: f32[8,128], index: 0, kind: input, shape index: {}]   ;;  %s1511_s1 = inlined_call_operand.hbm [shape: s32[8,1], index: 1, kind: input, shape index: {}]   ;;  %s1512_s2 = inlined_call_operand.hbm [shape: f32[8,1], index: 2, kind: input, shape index: {}]   ;;  %s1513_s3 = inlined_call_operand.hbm [shape: f32[8,1], index: 3, kind: input, shape index: {}]   ;;  %s1514_s4 = inlined_call_operand.<no memory space> [shape: f32[1,1], index: 4, kind: input, shape index: {}]   ;;  %s1515_s5 = inlined_call_operand.hbm [shape: f32[256,128], index: 5, kind: input, shape index: {}]   ;;  %s1516_s6 = inlined_call_operand.hbm [shape: f32[1,256], index: 6, kind: input, shape index: {}]   ;;  %s1517_s7 = inlined_call_operand.hbm [shape: f32[8,256], index: 7, kind: output, shape index: {}]  }
   0x1   :  { %1528 = sst [smem:[#allocation21_spill]] %s1510_s0  ;;  %v12_v0 = vstv %s1514_s4 }
   0x2   :  { %1529 = sst [smem:[#allocation22_spill]] %s1511_s1  ;;  %13 = vst [vmem:[#allocation2] sm:$0x1] %v12_v0 }
   0x3   :  { %1530 = sst [smem:[#allocation23_spill]] %s1515_s5 }
   0x4   :  { %14 = vsyncpa [#allocation4], 0 }
   0x5   :  { %15 = vsyncpa [#allocation7], 0 }
   0x6   :  { %16 = vsyncpa [#allocation10], 0 }
   0x7   :  { %17 = vsyncpa [#allocation5], 0 }
   0x8   :  { %19 = vsyncpa [#allocation5 + $0x1], 0  ;;  %s1178_s26 = smov 0   ;;  %s1180_s27 = smov 0  }
   0x9   :  { %s1182_s28 = smov 0   ;;  %s1184_s29 = smov 0  }
   0xa LB: > { %s1199_s4 = sadd.s32 4294967295, %s1120_s29   ;;  %s665_s30 = sadd.s32 4294967294, %s1120_s29   ;;  %s1120_s29 = sphi %s1184_s29, %s1559_s29   ;;  %s1116_s28 = sphi %s1182_s28, %s1563_s28   ;;  %s1112_s27 = sphi %s1180_s27, %s1562_s27   ;;  %s1108_s26 = sphi %s1178_s26, %s1561_s26  }
   0xb   : > { %p150_p0 = scmp.ne.s32.totalorder %s1112_s27, %s1108_s26  ;;  %p1518_p1 = scmp.eq.s32.totalorder %s1199_s4, 0 }
   0xc   : > { %p206_p3 = scmp.eq.s32.totalorder %s665_s30, 1  ;;  %p666_p5 = scmp.ge.s32.totalorder %s1120_s29, 1 }
   0xd   : > { %p1208_p4 = por %p1518_p1, %p150_p0  ;;  %p213_p7 = scmp.lt.s32.totalorder %s1120_s29, 3 }
   0xe   : > { %p1213_p6 = por %p206_p3, %p150_p0  ;;  %s1122_s11 = smov [#allocation3]  }
   0xf   : > { %s1531_s8 = scalar_select %p1208_p4, 1, 0 }
  0x10   : > { %s1532_s9 = scalar_select %p1213_p6, 1, 0 }
  0x11   : > { %p1218_p8 = pnand %p666_p5, %p213_p7  ;;  %s226_s12 = sshll.u32 %s1122_s11, 4  ;;  %s227_s12 = int_to_ptr.vmem [resolvable:$true] %s226_s12 }
  0x12   : > { %s1123_s13 = smov [#allocation6]   ;;  %s1234_s16 = sadd.s32 1, %s1120_s29  }
  0x13   : > { %s1533_s10 = scalar_select %p1218_p8, 1, 0 }
  0x14   : > { %p792_p10 = pneg %p1218_p8  ;;  %s237_s14 = sshll.u32 %s1123_s13, 4  ;;  %s1231_s14 = int_to_ptr.vmem [resolvable:$true] %s237_s14 }
  0x15   : > { %1535 = sst [smem:[#allocation19_spill]] %s1234_s16  ;;  %s134_s17 = ssub.s32 %s1120_s29, %s1234_s16 }
  0x16   : > { %p1227_p11 = pnand %p792_p10, %p1518_p1  ;;  %s1536_s0 = sld [smem:[#allocation21_spill]] }
  0x18   : > { %s1534_s15 = scalar_select %p1227_p11, 1, 0 }
  0x19   : > { %p1246_p13 = pneg %p1227_p11 }
  0x1c   : > { %s870_s20 = scalar_lea.hbm %s1536_s0, 128 }
  0x1d   : > { %p871_p12 = scmp.ne.s32.totalorder %s1536_s0, %s870_s20  ;;  %p877_p5 = scmp.lt.u32.totalorder %s870_s20, %s1536_s0 }
  0x1f   : > { %p873_p0 = pnand %p1246_p13, %p871_p12 }
  0x21   : > { %p874_p3 = pneg %p873_p0 }
  0x23   : > { %p879_p7 = pnand %p877_p5, %p874_p3 }
  0x25   : > { %882 = shalt.err (!%p879_p7)
}
  0x26   : > { %s883_s30 = scalar_lea.vmem %s227_s12, 128  ;;  %p891_p2 = scmp.lt.s32.totalorder %s227_s12, %s227_s12 }
  0x27   : > { %p884_p10 = scmp.ne.s32.totalorder %s227_s12, %s883_s30  ;;  %p892_p6 = scmp.lt.s32.totalorder %s883_s30, %s883_s30 }
  0x29   : > { %p886_p9 = pnand %p884_p10, %p1246_p13  ;;  %p893_p4 = por %p892_p6, %p891_p2 }
  0x2b   : > { %p887_p1 = pneg %p886_p9 }
  0x2d   : > { %p894_p8 = pnand %p893_p4, %p887_p1 }
  0x2f   : > { %897 = shalt.err (!%p894_p8)
}
  0x30   : > { %795 = dma.hbm_to_vmem [thread:$0]  (!%p1227_p11), %s1536_s0, 128, %s227_s12, [#allocation4]  }
  0x31   : > { %s1538_s1 = sld [smem:[#allocation22_spill]] }
  0x37   : > { %s898_s20 = scalar_lea.hbm %s1538_s1, 128 }
  0x38   : > { %p899_p9 = scmp.ne.s32.totalorder %s1538_s1, %s898_s20  ;;  %p905_p1 = scmp.lt.u32.totalorder %s898_s20, %s1538_s1 }
  0x3a   : > { %p901_p12 = pnand %p899_p9, %p1246_p13 }
  0x3c   : > { %p902_p2 = pneg %p901_p12 }
  0x3e   : > { %p907_p4 = pnand %p905_p1, %p902_p2 }
  0x40   : > { %910 = shalt.err (!%p907_p4)
}
  0x41   : > { %s911_s12 = scalar_lea.vmem %s1231_s14, 128  ;;  %p919_p3 = scmp.lt.s32.totalorder %s1231_s14, %s1231_s14 }
  0x42   : > { %p912_p6 = scmp.ne.s32.totalorder %s1231_s14, %s911_s12  ;;  %p920_p5 = scmp.lt.s32.totalorder %s911_s12, %s911_s12 }
  0x44   : > { %p914_p8 = pnand %p912_p6, %p1246_p13  ;;  %p921_p7 = por %p920_p5, %p919_p3 }
  0x46   : > { %p915_p0 = pneg %p914_p8 }
  0x48   : > { %p922_p10 = pnand %p921_p7, %p915_p0 }
  0x4a   : > { %925 = shalt.err (!%p922_p10)
}
  0x4b   : > { %798 = dma.hbm_to_vmem [thread:$0]  (!%p1227_p11), %s1538_s1, 128, %s1231_s14, [#allocation7]  }
  0x4c   : > { %p135_p9 = scmp.eq.s32.totalorder %s134_s17, 0  ;;  %s137_s13 = sadd.s32 1, %s1116_s28 }
  0x4d   : > { %p144_p12 = scmp.ne.s32.totalorder %s1116_s28, %s1112_s27  ;;  %p145_p2 = scmp.eq.s32.totalorder %s1120_s29, 0 }
  0x4e   : > { %s1293_s18 = scalar_select %p135_p9, %s1116_s28, %s137_s13  }
  0x4f   : > { %p146_p1 = por %p145_p2, %p144_p12  ;;  %p1540_p4 = scmp.eq.s32.totalorder %s1199_s4, 1 }
  0x50   : > { %1539 = sst [smem:[#allocation20_spill]] %s1293_s18  ;;  %p820_p8 = scmp.lt.s32.totalorder %s1120_s29, 2 }
  0x51   : > { %p1297_p6 = por %p1540_p4, %p144_p12  ;;  %s273_s20 = sand.u32 1, %s1120_s29  }
  0x52   : > { %s1521_s21 = sand.u32 1, %s1116_s28   ;;  %s693_s24 = sshll.u32 %s1120_s29, 11 }
  0x53   : > { %s1541_s19 = scalar_select %p1297_p6, 1, 0 }
  0x54   : > { %s672_s22 = sshll.u32 %s1521_s21, 7  ;;  %s1542_s5 = sld [smem:[#allocation23_spill]] }
  0x55   : > { %s277_s12 = scalar_lea.vmem [#allocation11], %s672_s22  ;;  %p1312_p0 = pnand %p820_p8, %p146_p1 }
  0x56   : > { %s284_s30 = sshll.u32 %s277_s12, 4  ;;  %s1318_s13 = scalar_lea.sflag [#allocation4], %s273_s20  ;;  %s1316_s30 = int_to_ptr.vmem [resolvable:$true] %s284_s30 }
  0x57   : > { %p1527_p5 = pneg %p1312_p0 }
  0x5a   : > { %s1310_s17 = scalar_lea.hbm %s1542_s5, %s693_s24  ;;  %s931_s14 = scalar_lea.hbm %s1542_s5, 4096 }
  0x5b   : > { %s926_s21 = scalar_lea.hbm %s1310_s17, 2048  ;;  %p932_p9 = scmp.lt.u32.totalorder %s1310_s17, %s1542_s5 }
  0x5c   : > { %p927_p3 = scmp.ne.s32.totalorder %s1310_s17, %s926_s21  ;;  %p933_p12 = scmp.lt.u32.totalorder %s931_s14, %s926_s21 }
  0x5d   : > { %p935_p1 = scmp.lt.u32.totalorder %s926_s21, %s1310_s17 }
  0x5e   : > { %p929_p7 = pnand %p1527_p5, %p927_p3  ;;  %p934_p2 = por %p933_p12, %p932_p9 }
  0x60   : > { %p930_p10 = pneg %p929_p7  ;;  %p936_p4 = por %p935_p1, %p934_p2 }
  0x62   : > { %p937_p8 = pnand %p936_p4, %p930_p10 }
  0x64   : > { %940 = shalt.err (!%p937_p8)
}
  0x65   : > { %s941_s20 = scalar_lea.vmem %s1316_s30, 2048  ;;  %s1124_s22 = smov [#allocation11]  }
  0x66   : > { %p942_p3 = scmp.ne.s32.totalorder %s1316_s30, %s941_s20  ;;  %s946_s24 = sshll.u32 %s1124_s22, 4  ;;  %s947_s24 = int_to_ptr.vmem [resolvable:$false] %s946_s24 }
  0x67   : > { %s948_s25 = scalar_lea.vmem %s947_s24, 4096  ;;  %p949_p11 = scmp.lt.s32.totalorder %s1316_s30, %s947_s24 }
  0x68   : > { %p944_p7 = pnand %p942_p3, %p1527_p5  ;;  %p950_p9 = scmp.lt.s32.totalorder %s948_s25, %s941_s20 }
  0x6a   : > { %p945_p6 = pneg %p944_p7  ;;  %p951_p12 = por %p950_p9, %p949_p11 }
  0x6c   : > { %p952_p2 = pnand %p951_p12, %p945_p6 }
  0x6e   : > { %955 = shalt.err (!%p952_p2)
}
  0x6f   : > { %s1125_s21 = smov 128   ;;  %s1126_s14 = smov 8  }
  0x70   : > { %808 = dma.hbm_to_vmem [thread:$0]  (!%p1312_p0), %s1310_s17, 2048, %s1316_s30, %s1318_s13, %s1125_s21, %s1125_s21, %s1126_s14  }
  0x71   : > { %s1127_s12 = smov [#allocation8]   ;;  %s1128_s1 = smov [#allocation9]  }
  0x72   : > { %s248_s0 = sshll.u32 %s1127_s12, 4  ;;  %s259_s22 = sshll.u32 %s1128_s1, 4  ;;  %s249_s0 = int_to_ptr.vmem [resolvable:$true] %s248_s0  ;;  %s1346_s22 = int_to_ptr.vmem [resolvable:$true] %s259_s22 }
  0x73   : > { %s956_s25 = scalar_lea.hbm %s1512_s2, 128 }
  0x74   : > { %p957_p11 = scmp.ne.s32.totalorder %s1512_s2, %s956_s25  ;;  %p963_p1 = scmp.lt.u32.totalorder %s956_s25, %s1512_s2 }
  0x76   : > { %p959_p6 = pnand %p957_p11, %p1246_p13 }
  0x78   : > { %p960_p10 = pneg %p959_p6 }
  0x7a   : > { %p965_p4 = pnand %p963_p1, %p960_p10 }
  0x7c   : > { %968 = shalt.err (!%p965_p4)
}
  0x7d   : > { %s969_s1 = scalar_lea.vmem %s249_s0, 128  ;;  %p977_p9 = scmp.lt.s32.totalorder %s249_s0, %s249_s0 }
  0x7e   : > { %p970_p8 = scmp.ne.s32.totalorder %s249_s0, %s969_s1  ;;  %p978_p12 = scmp.lt.s32.totalorder %s969_s1, %s969_s1 }
  0x80   : > { %p972_p3 = pnand %p970_p8, %p1246_p13  ;;  %p979_p2 = por %p978_p12, %p977_p9 }
  0x82   : > { %p973_p7 = pneg %p972_p3 }
  0x84   : > { %p980_p5 = pnand %p979_p2, %p973_p7 }
  0x86   : > { %983 = shalt.err (!%p980_p5)
}
  0x87   : > { %p1544_p11 = scmp.ne.s32.totalorder %s1534_s15, 0  ;;  %s984_s21 = scalar_lea.hbm %s1513_s3, 128 }
  0x88   : > { %p985_p6 = scmp.ne.s32.totalorder %s1513_s3, %s984_s21  ;;  %p991_p5 = scmp.lt.u32.totalorder %s984_s21, %s1513_s3 }
  0x89   : > { %801 = dma.hbm_to_vmem [thread:$0]  (!%p1544_p11), %s1512_s2, 128, %s249_s0, [#allocation7]  }
  0x8a   : > { %p987_p10 = pnand %p985_p6, %p1246_p13 }
  0x8c   : > { %p988_p1 = pneg %p987_p10 }
  0x8e   : > { %p993_p4 = pnand %p991_p5, %p988_p1 }
  0x90   : > { %996 = shalt.err (!%p993_p4)
}
  0x91   : > { %s997_s0 = scalar_lea.vmem %s1346_s22, 128  ;;  %p1005_p9 = scmp.lt.s32.totalorder %s1346_s22, %s1346_s22 }
  0x92   : > { %p998_p8 = scmp.ne.s32.totalorder %s1346_s22, %s997_s0  ;;  %p1006_p12 = scmp.lt.s32.totalorder %s997_s0, %s997_s0 }
  0x94   : > { %p1000_p3 = pnand %p998_p8, %p1246_p13  ;;  %p1007_p2 = por %p1006_p12, %p1005_p9 }
  0x96   : > { %p1001_p7 = pneg %p1000_p3 }
  0x98   : > { %p1008_p6 = pnand %p1007_p2, %p1001_p7 }
  0x9a   : > { %1011 = shalt.err (!%p1008_p6)
}
  0x9b   : > { %804 = dma.hbm_to_vmem [thread:$0]  (!%p1544_p11), %s1513_s3, 128, %s1346_s22, [#allocation10]  }
  0x9c   : > { %s675_s1 = sshll.u32 %s1120_s29, 4  ;;  %s1545_s16 = sand.u32 1, %s1116_s28  }
  0x9d   : > { %s1393_s18 = scalar_lea.hbm %s1516_s6, %s675_s1  ;;  %s297_s15 = scalar_lea.vmem [#allocation12], %s1545_s16 }
  0x9e   : > { %s304_s30 = sshll.u32 %s297_s15, 4  ;;  %s1012_s21 = scalar_lea.hbm %s1393_s18, 16  ;;  %s305_s30 = int_to_ptr.vmem [resolvable:$true] %s304_s30 }
  0x9f   : > { %p1013_p13 = scmp.ne.s32.totalorder %s1393_s18, %s1012_s21  ;;  %p1546_p10 = pneg %p1312_p0 }
  0xa0   : > { %s1017_s12 = scalar_lea.hbm %s1516_s6, 32  ;;  %p1018_p5 = scmp.lt.u32.totalorder %s1393_s18, %s1516_s6 }
  0xa1   : > { %p1015_p1 = pnand %p1013_p13, %p1546_p10  ;;  %p1019_p4 = scmp.lt.u32.totalorder %s1017_s12, %s1012_s21 }
  0xa2   : > { %p1021_p3 = scmp.lt.u32.totalorder %s1012_s21, %s1393_s18 }
  0xa3   : > { %p1016_p11 = pneg %p1015_p1  ;;  %p1020_p8 = por %p1019_p4, %p1018_p5 }
  0xa5   : > { %p1022_p7 = por %p1021_p3, %p1020_p8 }
  0xa7   : > { %p1023_p9 = pnand %p1022_p7, %p1016_p11 }
  0xa9   : > { %1026 = shalt.err (!%p1023_p9)
}
  0xaa   : > { %s1027_s0 = scalar_lea.vmem %s305_s30, 16  ;;  %p1547_p2 = pmov %p1546_p10 }
  0xab   : > { %p1028_p12 = scmp.ne.s32.totalorder %s305_s30, %s1027_s0  ;;  %s1129_s25 = smov [#allocation12]  }
  0xac   : > { %s1032_s17 = sshll.u32 %s1129_s25, 4  ;;  %s1033_s17 = int_to_ptr.vmem [resolvable:$false] %s1032_s17 }
  0xad   : > { %p1030_p6 = pnand %p1028_p12, %p1547_p2  ;;  %s1034_s1 = scalar_lea.vmem %s1033_s17, 32 }
  0xae   : > { %p1035_p10 = scmp.lt.s32.totalorder %s305_s30, %s1033_s17  ;;  %p1036_p1 = scmp.lt.s32.totalorder %s1034_s1, %s1027_s0 }
  0xaf   : > { %p1031_p13 = pneg %p1030_p6 }
  0xb0   : > { %p1037_p4 = por %p1036_p1, %p1035_p10 }
  0xb2   : > { %p1038_p5 = pnand %p1037_p4, %p1031_p13 }
  0xb4   : > { %1041 = shalt.err (!%p1038_p5)
}
  0xb5   : > { %811 = dma.hbm_to_vmem [thread:$0]  (!%p1312_p0), %s1393_s18, 16, %s305_s30, %s1318_s13  }
  0xb6   : > { %p1548_p11 = scmp.ne.s32.totalorder %s1533_s10, 0 }
  0xb7   : > { %p1549_p8 = scmp.eq.s32.totalorder (!%p1548_p11), %s1199_s4, 0 }
  0xb8   : > { %313 = sbr.rel (%p1548_p11) target bundleno = 531 (0x213), region = 48 }
  0xbf   : > { %1087 = dma.done.wait (%p1549_p8), [#allocation4], 128   ;;  %p1550_p3 = pmov %p1549_p8 }
  0xc1   : > { %1089 = vsyncadd (%p1550_p3), [#allocation4], 4294967168  ;;  %p1551_p7 = pmov %p1550_p3 }
  0xc2   : > { %p1552_p9 = pmov %p1550_p3 }
  0xc3   : > { %1091 = dma.done.wait (%p1551_p7), [#allocation7], 256  }
  0xc4   : > { %1093 = vsyncadd (%p1552_p9), [#allocation7], 4294967040  ;;  %p1553_p12 = pmov %p1550_p3 }
  0xc5   : > { %p1554_p0 = pmov %p1550_p3 }
  0xc6   : > { %1095 = dma.done.wait (%p1553_p12), [#allocation10], 128  }
  0xc7   : > { %1097 = vsyncadd (%p1554_p0), [#allocation10], 4294967168  ;;  %s331_s10 = sand.u32 1, %s1199_s4   ;;  %s1433_s11 = sand.u32 1, %s1112_s27  }
  0xc8   : > { %s681_s13 = sshll.u32 %s1433_s11, 7  ;;  %s332_s23 = scalar_lea.sflag [#allocation4], %s331_s10 }
  0xc9   : > { %s1436_s5 = scalar_lea.vmem [#allocation11], %s681_s13  ;;  %p1555_p2 = scmp.ne.s32.totalorder %s1531_s8, 0 }
  0xcb   : > { %1099 = dma.done.wait (%p1555_p2), %s332_s23, 2064  }
  0xcc   : > { %1101 = vsyncadd (%p1555_p2), %s332_s23, 4294965232  ;;  %s682_s18 = sshll.u32 %s1433_s11, 3  ;;  %v1130_v1 = vmov 0.0|0.0   ;;  %vm1131_vm0 = vmmov 0   ;;  %v1132_v2 = vmov 0.0   ;;  %v1133_v3 = vmov 0  }
  0xcd   : > { %746 = vmatprep.subr.bf16.mxu0 %v1130_v1  ;;  %743 = vmatprep.mubr.msk.f32.mxu0 %vm1131_vm0, %v1132_v2  ;;  %v380_v4 = vld [vmem:[%s1436_s5] sm:$0xff]  ;;  %v381_v5 = vld [vmem:[%s1436_s5 + $0x8] sm:$0xff]  ;;  %v382_v7 = vld [vmem:[%s1436_s5 + $0x10] sm:$0xff]  ;;  %v476_v33 = vlaneseq  ;;  %s343_s8 = scalar_lea.vmem [#allocation12], %s1433_s11  ;;  %s685_s16 = sshll.u32 %s1199_s4, 7 }
  0xce   : > { %868 = vset.pattern.permute.xlu0 %v1133_v3  ;;  %869 = vset.pattern.permute.xlu1 %v1133_v3  ;;  %v747_v6 = vpack.c.bf16 %v381_v5, %v380_v4  ;;  %v383_v8 = vld [vmem:[%s1436_s5 + $0x18] sm:$0xff]  ;;  %v481_v10 = vld [vmem:[#allocation6] sm:$0xff]  ;;  %v487_v12 = vld [vmem:[#allocation8] sm:$0xff]  ;;  %v479_v40 = vstv %s685_s16  ;;  %s377_s15 = scalar_lea.vmem [#allocation13], %s682_s18  ;;  %p687_p6 = scmp.ne.s32.totalorder %s1199_s4, 1 }
  0xcf   : > { %v686_v9 = vld [vmem:[#allocation2] ss:$0 sm:$0xff]  ;;  %v750_v11 = vpack.c.bf16 %v383_v8, %v382_v7  ;;  %483 = vperm.xlu1 %869, %v481_v10   ;;  %v384_v14 = vld [vmem:[%s1436_s5 + $0x20] sm:$0xff]  ;;  %v385_v15 = vld [vmem:[%s1436_s5 + $0x28] sm:$0xff]  ;;  %v477_v38 = vand.u32 127, %v476_v33 }
  0xd0   : > { %748 = vmatpush3.bf16.xpose.msra.mxu0 %v747_v6  ;;  %500 = vperm.xlu0 %868, %v686_v9   ;;  %v506_v13 = vld [vmem:[#allocation9] sm:$0xff]  ;;  %v753_v16 = vpack.c.bf16 %v385_v15, %v384_v14  ;;  %v386_v17 = vld [vmem:[%s1436_s5 + $0x30] sm:$0xff]  ;;  %v388_v20 = vld [vmem:[%s1436_s5 + $0x40] sm:$0xff] }
  0xd1   : > { %749 = vmatprep.subr.bf16.mxu0 %v1130_v1  ;;  %v387_v18 = vld [vmem:[%s1436_s5 + $0x38] sm:$0xff]  ;;  %v389_v21 = vld [vmem:[%s1436_s5 + $0x48] sm:$0xff]  ;;  %v390_v23 = vld [vmem:[%s1436_s5 + $0x50] sm:$0xff]  ;;  %v480_v44 = vadd.s32 %v479_v40, %v477_v38 }
  0xd2   : > { %v756_v19 = vpack.c.bf16 %v387_v18, %v386_v17  ;;  %v759_v22 = vpack.c.bf16 %v389_v21, %v388_v20  ;;  %v391_v24 = vld [vmem:[%s1436_s5 + $0x58] sm:$0xff]  ;;  %v392_v26 = vld [vmem:[%s1436_s5 + $0x60] sm:$0xff]  ;;  %v393_v27 = vld [vmem:[%s1436_s5 + $0x68] sm:$0xff] }
  0xd3   : > { %509 = vperm.xlu1 %869, %v506_v13   ;;  %v762_v25 = vpack.c.bf16 %v391_v24, %v390_v23  ;;  %v765_v28 = vpack.c.bf16 %v393_v27, %v392_v26  ;;  %v394_v29 = vld [vmem:[%s1436_s5 + $0x70] sm:$0xff]  ;;  %v395_v30 = vld [vmem:[%s1436_s5 + $0x78] sm:$0xff]  ;;  %v379_v32 = vld [vmem:[#allocation3] sm:$0xff]  ;;  %vm518_vm3 = vcmp.lt.s32.totalorder (!%p687_p6), %v480_v44, 200 }
  0xd4   : > { %490 = vperm.xlu0 %868, %v487_v12   ;;  %v768_v31 = vpack.c.bf16 %v395_v30, %v394_v29  ;;  %v683_v34 = vld [vmem:[%s343_s8] ss:$0 sm:$0xff] }
  0xd8   : > { %751 = vmatpush3.bf16.xpose.msra.mxu0 %v750_v11 }
  0xd9   : > { %752 = vmatprep.subr.bf16.mxu0 %v1130_v1 }
  0xe0   : > { %754 = vmatpush3.bf16.xpose.msra.mxu0 %v753_v16 }
  0xe1   : > { %755 = vmatprep.subr.bf16.mxu0 %v1130_v1 }
  0xe8   : > { %757 = vmatpush3.bf16.xpose.msra.mxu0 %v756_v19 }
  0xe9   : > { %758 = vmatprep.subr.bf16.mxu0 %v1130_v1 }
  0xf0   : > { %760 = vmatpush3.bf16.xpose.msra.mxu0 %v759_v22 }
  0xf1   : > { %761 = vmatprep.subr.bf16.mxu0 %v1130_v1 }
  0xf8   : > { %763 = vmatpush3.bf16.xpose.msra.mxu0 %v762_v25 }
  0xf9   : > { %764 = vmatprep.subr.bf16.mxu0 %v1130_v1 }
 0x100   : > { %766 = vmatpush3.bf16.xpose.msra.mxu0 %v765_v28 }
 0x101   : > { %767 = vmatprep.subr.bf16.mxu0 %v1130_v1 }
 0x108   : > { %769 = vmatpush3.bf16.xpose.msra.mxu0 %v768_v31 }
 0x10f   : > { %744 = vmatmul.mubr.f32.vlgmr.msra.gmra.mrb[0].mxu0 %v379_v32 }
 0x14e   : > { %v484_v42 = vpop.permute.xlu1 %483 }
 0x14f   : > { %v501_v35 = vpop.permute.xlu0 %500  ;;  %vm485_vm2 = vcmp.eq.s32.totalorder %v480_v44, %v484_v42 }
 0x152   : > { %v510_v48 = vpop.permute.xlu1 %509 }
 0x153   : > { %v491_v45 = vpop.permute.xlu0 %490 }
 0x1e2   : > { %v462_v36 = vpop.f32.mrb[0].mxu0 }
 0x1e3   : > { %v473_v37 = vmul.f32 %v683_v34, %v462_v36  ;;  %v745_v39 = vpop.f32.mrb[1].mxu0 }
 0x1e5   : > { %v684_v41 = vclamps-f32 %v473_v37, 1.0 }
 0x1e7   : > { %v503_v43 = vadd.f32 %v684_v41, %v501_v35  ;;  %vm493_vm1 = vcmp.gt.f32.partialorder %v684_v41, %v491_v45  ;;  %517 = sbr.rel (%p687_p6) target bundleno = 497 (0x1f1), region = 76 }
 0x1e9   : > { %v504_v46 = vmul.f32 %v684_v41, %v503_v43 }
 0x1eb   : > { %v505_v47 = vsel %vm493_vm1, %v504_v46, %v684_v41 }
 0x1ec   : > { %v512_v49 = vsel %vm485_vm2, %v510_v48, %v505_v47 }
 0x1ed   : > { %v513_v50 = vmul.f32 64.0, %v512_v49 }
 0x1ef   : > { %v519_v51 = vsel %vm518_vm3, %v513_v50, -1e+30 }
 0x1f0   : > { %520 = vst [vmem:[%s377_s15] sm:$0xff] %v519_v51 }
 0x1f1 PF: > { %p688_p13 = scmp.ge.s32.totalorder %s1199_s4, 1 }
 0x1f2   : > { %525 = vst [vmem:[%s377_s15] sm:$0xff] (!%p688_p13), %v513_v50 }
 0x1f3   : > { %524 = sbr.rel (%p688_p13) target bundleno = 506 (0x1fa), region = 80 }
 0x1fa PF: > { %s1472_s22 = scalar_lea.hbm %s1517_s7, %s685_s16  ;;  %s540_s14 = sshll.u32 %s377_s15, 4  ;;  %s541_s14 = int_to_ptr.vmem [resolvable:$true] %s540_s14 }
 0x1fb   : > { %s527_s12 = scalar_lea.sflag [#allocation5], %s1433_s11  ;;  %s1042_s20 = scalar_lea.vmem %s541_s14, 128 }
 0x1fc   : > { %p1043_p10 = scmp.ne.s32.totalorder %s541_s14, %s1042_s20  ;;  %p1556_p1 = scmp.ne.s32.totalorder %s1541_s19, 0 }
 0x1fd   : > { %s1134_s24 = smov [#allocation13]  }
 0x1fe   : > { %p1044_p4 = pnand %p1043_p10, %p1556_p1  ;;  %s1046_s0 = sshll.u32 %s1134_s24, 4  ;;  %s1047_s0 = int_to_ptr.vmem [resolvable:$false] %s1046_s0 }
 0x1ff   : > { %s1048_s25 = scalar_lea.vmem %s1047_s0, 256  ;;  %p1049_p11 = scmp.lt.s32.totalorder %s541_s14, %s1047_s0 }
 0x200   : > { %p1045_p5 = pneg %p1044_p4  ;;  %p1050_p8 = scmp.lt.s32.totalorder %s1048_s25, %s1042_s20 }
 0x202   : > { %p1051_p3 = por %p1050_p8, %p1049_p11 }
 0x204   : > { %p1052_p7 = pnand %p1051_p3, %p1045_p5 }
 0x206   : > { %1055 = shalt.err (!%p1052_p7)
}
 0x207   : > { %s1056_s4 = scalar_lea.hbm %s1472_s22, 128  ;;  %s1060_s10 = scalar_lea.hbm %s1517_s7, 256 }
 0x208   : > { %p1057_p9 = scmp.ne.s32.totalorder %s1472_s22, %s1056_s4  ;;  %p1061_p2 = scmp.lt.u32.totalorder %s1472_s22, %s1517_s7 }
 0x209   : > { %p1062_p6 = scmp.lt.u32.totalorder %s1060_s10, %s1056_s4  ;;  %p1064_p10 = scmp.lt.u32.totalorder %s1056_s4, %s1472_s22 }
 0x20a   : > { %p1058_p12 = pnand %p1057_p9, %p1556_p1 }
 0x20b   : > { %p1063_p13 = por %p1062_p6, %p1061_p2 }
 0x20c   : > { %p1059_p0 = pneg %p1058_p12 }
 0x20d   : > { %p1065_p4 = por %p1064_p10, %p1063_p13 }
 0x20f   : > { %p1066_p5 = pnand %p1065_p4, %p1059_p0 }
 0x211   : > { %1069 = shalt.err (!%p1066_p5)
}
 0x212   : > { %790 = dma.vmem_to_hbm [thread:$0]  (%p1556_p1), %s541_s14, 128, %s1472_s22, %s527_s12  }
 0x213 PF: > { %s552_s23 = sand.u32 1, %s1108_s26   ;;  %p1557_p11 = scmp.ne.s32.totalorder %s1532_s9, 0 }
 0x214   : > { %p1558_p8 = scmp.ge.s32.totalorder %s1120_s29, 2  ;;  %s553_s5 = scalar_lea.sflag [#allocation5], %s552_s23 }
 0x216   : > { %p813_p3 = pnand %p1558_p8, %p1557_p11 }
 0x218   : > { %1103 = dma.done.wait (!%p813_p3), %s553_s5, 128  }
 0x219   : > { %1105 = vsyncadd (!%p813_p3), %s553_s5, 4294967168  ;;  %s1559_s29 = sld [smem:[#allocation19_spill]]  ;;  %s1560_s18 = sld [smem:[#allocation20_spill]] }
 0x21a   : > { %s1561_s26 = smov %s1112_s27  ;;  %s1562_s27 = smov %s1116_s28 }
 0x21f   : > { %p22_p7 = scmp.ge.s32.totalorder %s1559_s29, 4   ;;  %s1563_s28 = smov %s1560_s18 }
 0x221   :  { %24 = sbr.rel (!%p22_p7) target bundleno = 10 (0xa), region = 127 }
 0x228   :  { %558 = vsyncpa [#allocation4], 1 }
 0x229   :  { %560 = vsyncpa [#allocation4 + $0x1], 1 }
 0x22a   :  { %561 = vsyncpa [#allocation7], 1 }
 0x22b   :  { %562 = vsyncpa [#allocation10], 1 }
 0x22c   :  { %563 = vsyncpa [#allocation5], 1 }
 0x22d   :  { %565 = vsyncpa [#allocation5 + $0x1], 1 }

</bundles_post_ra>
